<compile_context>
chip_gen: v6e
topology: v6e:2x2x1
jax: 0.10.0
libtpu: 0.0.40
codegen_flags: <defaults>
</compile_context>

<pallas_src>
import functools
import math

import jax
import jax.numpy as jnp
from jax import lax
from jax.experimental import pallas as pl
from jax.experimental.pallas import tpu as pltpu

BLOCKSIZE = 4096  # bitsandbytes quantize_blockwise default block size
VMEM_LIMIT = 48 * 1024 * 1024  # <= ~48 MiB: safe on v7x (64 MiB), raises v5e/v6e scoped default


def _round_up(a, b):
    return (a + b - 1) // b * b


def _pick_tile(dim, preferred, unit):
    """Largest multiple of `unit` <= min(preferred, dim) that divides `dim` (avoids a
    full-array pad copy); falls back to a padded tile if no divisor exists."""
    cap = max(unit, (min(preferred, dim) // unit) * unit)
    for t in range(cap, 0, -unit):
        if dim % t == 0:
            return t
    return cap


def _dequantize_blockwise(weight_u8, absmax, code):
    """Reference bnb dequantize_blockwise: code[w] * absmax[flat_index // BLOCKSIZE] (f32)."""
    N, K = weight_u8.shape
    numel = N * K
    n_blocks = (numel + BLOCKSIZE - 1) // BLOCKSIZE
    vals = code.astype(jnp.float32)[weight_u8.reshape(-1).astype(jnp.int32)]
    vals = jnp.pad(vals, (0, n_blocks * BLOCKSIZE - numel))
    vals = vals.reshape(n_blocks, BLOCKSIZE) * absmax.astype(jnp.float32)[:, None]
    return vals.reshape(-1)[:numel].reshape(N, K)


# ---------------------------------------------------------------------------
# Fused kernel: uint8 weight streaming + in-kernel codebook LUT + MXU matmul.
# ---------------------------------------------------------------------------
def _fused_dequant_matmul_kernel(x_ref, w_ref, scale_ref, code_ref, bias_ref,
                                 o_ref, acc_ref, wbuf_ref, *, blocks_per_scale):
    """One (tm, tn) output tile, accumulated over the K grid axis.

    x_ref     : (tm, tk)  bf16   activations
    w_ref     : (tn, tk)  uint8  quantized codes (nn.Linear layout: [out, in])
    scale_ref : (KB, tn)  f32    per-(4096-block column-group, out-row) absmax
    code_ref  : (2, 128)  f32    256-entry codebook, split into low/high 128 lanes
    bias_ref  : (1, tn)   f32
    o_ref     : (tm, tn)  f32
    acc_ref   : (tm, tn)  f32    VMEM accumulator scratch
    wbuf_ref  : (tn, tk)  bf16   VMEM scratch for the dequantized (unscaled) weight tile
    """

    @pl.when(pl.program_id(2) == 0)
    def _init():
        acc_ref[...] = jnp.zeros_like(acc_ref)

    tn, tk = w_ref.shape
    code = code_ref[...]
    # Hoisted out of the chunk loop (JAX does not CSE broadcast_in_dim).
    code_lo = jnp.broadcast_to(code[0:1, :], (tn, 128))
    code_hi = jnp.broadcast_to(code[1:2, :], (tn, 128))

    # 256-entry LUT as two per-vreg 128-lane gathers + select, one 128-lane chunk at a time
    # (same-shape take_along_axis along the lane dim maps to the hardware dynamic gather).
    for c in range(tk // 128):
        cols = slice(c * 128, (c + 1) * 128)
        idx_c = w_ref[:, cols].astype(jnp.int32)           # (tn, 128)
        lane = idx_c & 0x7F                                 # low 7 bits -> in-vreg lane index
        v_lo = jnp.take_along_axis(code_lo, lane, axis=1, mode="promise_in_bounds")
        v_hi = jnp.take_along_axis(code_hi, lane, axis=1, mode="promise_in_bounds")
        wbuf_ref[:, cols] = jnp.where(idx_c >= 128, v_hi, v_lo).astype(wbuf_ref.dtype)

    # x @ code[w].T without materializing a transpose: contract K of both operands (the same
    # NT form flash-attention uses), avoiding an extra HBM pass to pre-transpose the u8 weight.
    contrib = lax.dot_general(
        x_ref[...], wbuf_ref[...],
        dimension_numbers=(((1,), (1,)), ((), ())),
        preferred_element_type=jnp.float32,
    )
    # Blockwise absmax: constant per out-row within this K tile, so it can be applied to the
    # (tm, tn) partial product instead of per weight element.
    sblk = pl.program_id(2) // blocks_per_scale
    acc_ref[...] += contrib * scale_ref[pl.ds(sblk, 1), :]

    @pl.when(pl.program_id(2) == pl.num_programs(2) - 1)
    def _finalize():
        o_ref[...] = (acc_ref[...] + bias_ref[...]).astype(o_ref.dtype)


# ---------------------------------------------------------------------------
# Fallback kernel: wrapper-side dequant, bf16 weight already transposed to (K, N).
# ---------------------------------------------------------------------------
def _bf16_matmul_kernel(x_ref, wt_ref, bias_ref, o_ref, acc_ref):
    @pl.when(pl.program_id(2) == 0)
    def _init():
        acc_ref[...] = jnp.zeros_like(acc_ref)

    acc_ref[...] += jnp.dot(x_ref[...], wt_ref[...], preferred_element_type=jnp.float32)

    @pl.when(pl.program_id(2) == pl.num_programs(2) - 1)
    def _finalize():
        o_ref[...] = (acc_ref[...] + bias_ref[...]).astype(o_ref.dtype)


@functools.partial(jax.jit, static_argnames=("tm", "tn", "tk", "fuse_dequant"))
def frozen_bnb_linear(x, weight_u8, absmax, code, bias=None, *,
                      tm=512, tn=512, tk=2048, fuse_dequant=True):
    """Forward pass of FrozenBNBLinear.

    x         : (..., in_features)            f32
    weight_u8 : (out, in)                     uint8   quantized codes
    absmax    : (ceil(out*in/4096),)          f32     blockwise absmax
    code      : (256,)                        f32     codebook
    bias      : (out,) or None                f32
    returns   : (..., out)                    x.dtype
    """
    *lead, K = x.shape
    N, K2 = weight_u8.shape
    assert K == K2, "in_features mismatch"
    n_blocks = (N * K + BLOCKSIZE - 1) // BLOCKSIZE
    assert absmax.shape[0] == n_blocks, "absmax length mismatch"
    assert code.shape[0] == 256, "codebook must have 256 entries"
    M = math.prod(lead) if lead else 1
    out_dtype = x.dtype

    x2d = x.reshape(M, K).astype(jnp.bfloat16)
    b = jnp.zeros((N,), jnp.float32) if bias is None else bias.astype(jnp.float32)
    bias2d = b.reshape(1, N)

    # ---- tile selection (divisor tiles when possible; tm a multiple of 16 for bf16 packing) ----
    tm_e = min(_round_up(tm, 16), _round_up(M, 16))
    Mp = _round_up(M, tm_e)
    tn_e = _pick_tile(N, tn, 128)
    Np = _round_up(N, tn_e)
    # Decode-shaped M (single M tile): keep >=2 N tiles so both v7x TensorCores get work.
    if Mp // tm_e == 1 and Np // tn_e == 1 and tn_e % 256 == 0:
        tn_e //= 2

    fused = (fuse_dequant and K % 128 == 0
             and (K % BLOCKSIZE == 0 or BLOCKSIZE % K == 0))

    if fused:
        # Each K tile lies inside a single 4096-element quantization block (per out-row).
        cb = min(K, BLOCKSIZE)                 # columns covered by one flat 4096-block
        tk_e = _pick_tile(cb, tk, 128)         # divides cb -> divides K -> no K/weight padding
        KB = K // cb                           # number of column block-groups (>=1)
        blocks_per_scale = cb // tk_e

        # Tiny per-(column-group, out-row) scale table: scale[kb, n] = absmax[(n*K + kb*cb)//4096]
        n_idx = jnp.arange(N, dtype=jnp.int32)[None, :]
        kb_idx = jnp.arange(KB, dtype=jnp.int32)[:, None]
        scale = absmax.astype(jnp.float32)[(n_idx * K + kb_idx * cb) // BLOCKSIZE]   # (KB, N)
        code2d = code.astype(jnp.float32).reshape(2, 128)

        x_p = jnp.pad(x2d, ((0, Mp - M), (0, 0)))
        if Np == N:
            w_p, s_p, b_p = weight_u8, scale, bias2d
        else:
            w_p = jnp.pad(weight_u8, ((0, Np - N), (0, 0)))
            s_p = jnp.pad(scale, ((0, 0), (0, Np - N)))
            b_p = jnp.pad(bias2d, ((0, 0), (0, Np - N)))

        grid = (Mp // tm_e, Np // tn_e, K // tk_e)
        kernel = functools.partial(_fused_dequant_matmul_kernel,
                                   blocks_per_scale=blocks_per_scale)
        out = pl.pallas_call(
            kernel,
            out_shape=jax.ShapeDtypeStruct((Mp, Np), out_dtype),
            grid_spec=pltpu.PrefetchScalarGridSpec(
                num_scalar_prefetch=0,
                grid=grid,
                in_specs=[
                    pl.BlockSpec((tm_e, tk_e), lambda i, j, k: (i, k)),   # x (bf16)
                    pl.BlockSpec((tn_e, tk_e), lambda i, j, k: (j, k)),   # weight codes (u8)
                    pl.BlockSpec((KB, tn_e), lambda i, j, k: (0, j)),     # blockwise scales
                    pl.BlockSpec((2, 128), lambda i, j, k: (0, 0)),       # codebook (VMEM-resident)
                    pl.BlockSpec((1, tn_e), lambda i, j, k: (0, j)),      # bias
                ],
                out_specs=pl.BlockSpec((tm_e, tn_e), lambda i, j, k: (i, j)),
                scratch_shapes=[pltpu.VMEM((tm_e, tn_e), jnp.float32),
                                pltpu.VMEM((tn_e, tk_e), jnp.bfloat16)],
            ),
            compiler_params=pltpu.CompilerParams(
                dimension_semantics=("parallel", "parallel", "arbitrary"),
                vmem_limit_bytes=VMEM_LIMIT,
            ),
            cost_estimate=pl.CostEstimate(
                flops=2 * Mp * Np * K,
                transcendentals=0,
                bytes_accessed=(Mp * K * 2 + Np * K * 1 + (KB * Np + 256 + Np) * 4
                                + Mp * Np * jnp.dtype(out_dtype).itemsize),
            ),
        )(x_p, w_p, s_p, code2d, b_p)
    else:
        # Wrapper-side dequant fallback: bf16 weight, emitted pre-transposed to (K, N) so the
        # kernel uses the canonical (m,k)@(k,n) MXU form (no per-step transpose).
        w_t = _dequantize_blockwise(weight_u8, absmax, code).T.astype(jnp.bfloat16)  # (K, N)
        tk_e = _pick_tile(K, tk, 128)
        Kp = _round_up(K, tk_e)
        x_p = jnp.pad(x2d, ((0, Mp - M), (0, Kp - K)))
        w_p = w_t if (Kp == K and Np == N) else jnp.pad(w_t, ((0, Kp - K), (0, Np - N)))
        b_p = bias2d if Np == N else jnp.pad(bias2d, ((0, 0), (0, Np - N)))

        grid = (Mp // tm_e, Np // tn_e, Kp // tk_e)
        out = pl.pallas_call(
            _bf16_matmul_kernel,
            out_shape=jax.ShapeDtypeStruct((Mp, Np), out_dtype),
            grid_spec=pltpu.PrefetchScalarGridSpec(
                num_scalar_prefetch=0,
                grid=grid,
                in_specs=[
                    pl.BlockSpec((tm_e, tk_e), lambda i, j, k: (i, k)),
                    pl.BlockSpec((tk_e, tn_e), lambda i, j, k: (k, j)),
                    pl.BlockSpec((1, tn_e), lambda i, j, k: (0, j)),
                ],
                out_specs=pl.BlockSpec((tm_e, tn_e), lambda i, j, k: (i, j)),
                scratch_shapes=[pltpu.VMEM((tm_e, tn_e), jnp.float32)],
            ),
            compiler_params=pltpu.CompilerParams(
                dimension_semantics=("parallel", "parallel", "arbitrary"),
                vmem_limit_bytes=VMEM_LIMIT,
            ),
            cost_estimate=pl.CostEstimate(
                flops=2 * Mp * Np * Kp,
                transcendentals=0,
                bytes_accessed=(Mp * Kp * 2 + Kp * Np * 2 + Np * 4
                                + Mp * Np * jnp.dtype(out_dtype).itemsize),
            ),
        )(x_p, w_p, b_p)

    return out[:M, :N].reshape(*lead, N)


if __name__ == "__main__":
    # Small shapes: batch=2, seq=8, in_features=128, out_features=256
    # -> weight numel = 32768 = 8 quantization blocks of 4096.
    B, T, IN, OUT = 2, 8, 128, 256
    n_blocks = (OUT * IN + BLOCKSIZE - 1) // BLOCKSIZE

    key = jax.random.PRNGKey(0)
    k_x, k_w, k_a, k_b = jax.random.split(key, 4)

    x = jax.random.normal(k_x, (B, T, IN), dtype=jnp.float32)
    weight_u8 = jax.random.randint(k_w, (OUT, IN), 0, 256, dtype=jnp.int32).astype(jnp.uint8)
    absmax = jax.random.uniform(k_a, (n_blocks,), minval=0.5, maxval=2.0, dtype=jnp.float32)
    # Deterministic synthetic codebook (stand-in for bnb's dynamic quantization map).
    code = jnp.linspace(-1.0, 1.0, 256, dtype=jnp.float32)
    bias = 0.1 * jax.random.normal(k_b, (OUT,), dtype=jnp.float32)

    # Full-f32 reference forward (kernel uses bf16 operands on the MXU).
    w_deq = _dequantize_blockwise(weight_u8, absmax, code)
    ref = jnp.einsum("btk,nk->btn", x, w_deq, precision=lax.Precision.HIGHEST) + bias

    def _run(fuse):
        return jax.block_until_ready(
            frozen_bnb_linear(x, weight_u8, absmax, code, bias, fuse_dequant=fuse))

    out, ok = None, False
    try:
        out = _run(True)
        ok = bool(jnp.allclose(out, ref, atol=0.25, rtol=2.5e-2))
    except Exception:
        ok = False
    if not ok:
        # In-kernel u8 -> codebook gather did not lower / verify on this backend; fall back to
        # the wrapper-side dequant path (still a correctly tiled MXU matmul).
        out = _run(False)
        assert jnp.allclose(out, ref, atol=0.25, rtol=2.5e-2), "mismatch vs f32 reference"

    assert out.shape == (B, T, OUT)
    print("KERNEL_OK")
</pallas_src>

<mosaic_0001>
module attributes {stable_mosaic.version = 11 : i64} {
  func.func @_bf16_matmul_kernel(%arg0: i32, %arg1: i32, %arg2: i32, %arg3: memref<16x128xbf16, #tpu.memory_space<vmem>>, %arg4: memref<128x128xbf16, #tpu.memory_space<vmem>>, %arg5: memref<1x128xf32, #tpu.memory_space<vmem>>, %arg6: memref<16x128xf32, #tpu.memory_space<vmem>>, %arg7: memref<16x128xf32, #tpu.memory_space<vmem>>) attributes {dimension_semantics = [#tpu.dimension_semantics<parallel>, #tpu.dimension_semantics<parallel>, #tpu.dimension_semantics<arbitrary>], iteration_bounds = array<i64: 1, 2, 1>, scalar_prefetch = 0 : i64, scratch_operands = 1 : i64, tpu.core_type = #tpu.core_type<tc>, window_params = [{transform_indices = @transform_0, window_bounds = array<i64: 16, 128>}, {transform_indices = @transform_1, window_bounds = array<i64: 128, 128>}, {transform_indices = @transform_2, window_bounds = array<i64: 1, 128>}, {transform_indices = @transform_3, window_bounds = array<i64: 16, 128>}]} {
    %c0_i32 = arith.constant 0 : i32
    %0 = arith.cmpi eq, %arg2, %c0_i32 : i32
    %1 = arith.extui %0 : i1 to i32
    %c0_i32_0 = arith.constant 0 : i32
    %2 = arith.cmpi ne, %1, %c0_i32_0 : i32
    scf.if %2 {
      %cst_10 = arith.constant 0.000000e+00 : f32
      %12 = vector.broadcast %cst_10 : f32 to vector<16x128xf32>
      %c0_11 = arith.constant 0 : index
      %c0_12 = arith.constant 0 : index
      %13 = vector.load %arg7[%c0_11, %c0_12] : memref<16x128xf32, #tpu.memory_space<vmem>>, vector<16x128xf32>
      tpu.vector_store %arg7[%c0_11, %c0_12], %12 {strides = array<i32>} : memref<16x128xf32, #tpu.memory_space<vmem>>, vector<16x128xf32>,
    } else {
    }
    %c0 = arith.constant 0 : index
    %c0_1 = arith.constant 0 : index
    %3 = vector.load %arg7[%c0, %c0_1] : memref<16x128xf32, #tpu.memory_space<vmem>>, vector<16x128xf32>
    %c0_2 = arith.constant 0 : index
    %c0_3 = arith.constant 0 : index
    %4 = vector.load %arg3[%c0_2, %c0_3] : memref<16x128xbf16, #tpu.memory_space<vmem>>, vector<16x128xbf16>
    %c0_4 = arith.constant 0 : index
    %c0_5 = arith.constant 0 : index
    %5 = vector.load %arg4[%c0_4, %c0_5] : memref<128x128xbf16, #tpu.memory_space<vmem>>, vector<128x128xbf16>
    %cst = arith.constant dense<0.000000e+00> : vector<16x128xf32>
    %6 = tpu.matmul %4, %5, %cst {dimension_numbers = #tpu.dot_dimension_numbers<[1], [0], [0], [1], [0, 0, 1, 1], [], []>} : vector<16x128xbf16>, vector<128x128xbf16>, vector<16x128xf32> -> vector<16x128xf32>
    %7 = arith.addf %3, %6 : vector<16x128xf32>
    %c0_6 = arith.constant 0 : index
    %c0_7 = arith.constant 0 : index
    %8 = vector.load %arg7[%c0_6, %c0_7] : memref<16x128xf32, #tpu.memory_space<vmem>>, vector<16x128xf32>
    tpu.vector_store %arg7[%c0_6, %c0_7], %7 {strides = array<i32>} : memref<16x128xf32, #tpu.memory_space<vmem>>, vector<16x128xf32>,
    %c0_i32_8 = arith.constant 0 : i32
    %9 = arith.cmpi eq, %arg2, %c0_i32_8 : i32
    %10 = arith.extui %9 : i1 to i32
    %c0_i32_9 = arith.constant 0 : i32
    %11 = arith.cmpi ne, %10, %c0_i32_9 : i32
    scf.if %11 {
      %c0_10 = arith.constant 0 : index
      %c0_11 = arith.constant 0 : index
      %12 = vector.load %arg7[%c0_10, %c0_11] : memref<16x128xf32, #tpu.memory_space<vmem>>, vector<16x128xf32>
      %c0_12 = arith.constant 0 : index
      %c0_13 = arith.constant 0 : index
      %13 = vector.load %arg5[%c0_12, %c0_13] : memref<1x128xf32, #tpu.memory_space<vmem>>, vector<1x128xf32>
      %14 = vector.broadcast %13 : vector<1x128xf32> to vector<16x128xf32>
      %15 = arith.addf %12, %14 : vector<16x128xf32>
      %c0_14 = arith.constant 0 : index
      %c0_15 = arith.constant 0 : index
      %16 = vector.load %arg6[%c0_14, %c0_15] : memref<16x128xf32, #tpu.memory_space<vmem>>, vector<16x128xf32>
      tpu.vector_store %arg6[%c0_14, %c0_15], %15 {strides = array<i32>} : memref<16x128xf32, #tpu.memory_space<vmem>>, vector<16x128xf32>,
    } else {
    }
    return
  }
  func.func @transform_0(%arg0: i32, %arg1: i32, %arg2: i32) -> (i32, i32) {
    %c0_i32 = arith.constant 0 : i32
    return %arg0, %arg2 : i32, i32
  }
  func.func @transform_1(%arg0: i32, %arg1: i32, %arg2: i32) -> (i32, i32) {
    %c0_i32 = arith.constant 0 : i32
    return %arg2, %arg1 : i32, i32
  }
  func.func @transform_2(%arg0: i32, %arg1: i32, %arg2: i32) -> (i32, i32) {
    %c0_i32 = arith.constant 0 : i32
    %c0_i32_0 = arith.constant 0 : i32
    return %c0_i32, %arg1 : i32, i32
  }
  func.func @transform_3(%arg0: i32, %arg1: i32, %arg2: i32) -> (i32, i32) {
    %c0_i32 = arith.constant 0 : i32
    return %arg0, %arg1 : i32, i32
  }
}

</mosaic_0001>

<bundles_post_ra>
// kernel: frozen_bnb_linear.1
= control target key start
LH: loop header
LB: loop body
LE: loop exit
PB: predicated region body
PF: predicated region fallthrough
CT: control target
= control target key end

     0   :  { %8 = vsyncpa [#allocation5], 0  ;;  %s990_s0 = inlined_call_operand.vmem [shape: bf16[16,128], index: 0, kind: input, shape index: {}]   ;;  %s991_s1 = inlined_call_operand.vmem [shape: bf16[128,256], index: 1, kind: input, shape index: {}]   ;;  %s992_s2 = inlined_call_operand.vmem [shape: f32[1,256], index: 2, kind: input, shape index: {}]   ;;  %s993_s3 = inlined_call_operand.hbm [shape: f32[16,256], index: 3, kind: output, shape index: {}]  }
   0x1   :  { %10 = vsyncpa [#allocation5 + $0x1], 0  ;;  %s841_s12 = smov 0   ;;  %s843_s13 = smov 0  }
   0x2   :  { %s845_s14 = smov 0   ;;  %s847_s15 = smov 0  }
   0x3   :  { %s849_s16 = smov 0   ;;  %s851_s17 = smov 0  }
   0x4 LB: > { %s615_s18 = sadd.s32 4294967295, %s813_s17   ;;  %s616_s19 = sadd.s32 4294967294, %s813_s17   ;;  %s813_s17 = sphi %s851_s17, %s16_s17   ;;  %s809_s16 = sphi %s849_s16, %s1000_s16   ;;  %s805_s15 = sphi %s847_s15, %s999_s15   ;;  %s801_s14 = sphi %s845_s14, %s998_s14   ;;  %s797_s13 = sphi %s843_s13, %s997_s13   ;;  %s793_s12 = sphi %s841_s12, %s996_s12  }
   0x5   : > { %s31_s20 = sadd.s32 1, %s809_s16  ;;  %s72_s21 = sadd.s32 1, %s801_s14 }
   0x6   : > { %p33_p0 = scmp.ge.s32.totalorder %s31_s20, 2  ;;  %p79_p1 = scmp.ne.s32.totalorder %s801_s14, %s797_s13 }
   0x7   : > { %p80_p2 = scmp.eq.s32.totalorder %s813_s17, 0  ;;  %p137_p3 = scmp.eq.s32.totalorder %s615_s18, 1 }
   0x8   : > { %s1002_s20 = smov (%p33_p0, %s31_s20), 0  ;;  %p142_p6 = scmp.ne.s32.totalorder %s797_s13, %s793_s12 }
   0x9   : > { %p81_p4 = por %p80_p2, %p79_p1  ;;  %p880_p5 = por %p137_p3, %p79_p1 }
   0xa   : > { %s68_s23 = ssub.s32 %s809_s16, %s1002_s20  ;;  %p143_p8 = scmp.eq.s32.totalorder %s616_s19, 1 }
   0xb   : > { %p70_p7 = scmp.eq.s32.totalorder %s68_s23, 0  ;;  %p619_p10 = scmp.ge.s32.totalorder %s813_s17, 2 }
   0xc   : > { %p891_p9 = por %p143_p8, %p142_p6 }
   0xd   : > { %s889_s24 = scalar_select %p70_p7, %s801_s14, %s72_s21  }
   0xe   : > { %171 = sbr.rel (%p619_p10) target bundleno = 33 (0x21), region = 20 }
  0x13   : > { %174 = sbr.rel (!%p81_p4) target bundleno = 33 (0x21), region = 24  ;;  %s176_s26 = sand.u32 (%p81_p4), 1, %s801_s14  }
  0x14   : > { %s621_s27 = sshll.u32 (%p81_p4), %s809_s16, 2  ;;  %s620_s28 = sshll.u32 (%p81_p4), %s176_s26, 6 }
  0x15   : > { %s903_s4 = scalar_lea.vmem (%p81_p4), %s991_s1, %s621_s27  ;;  %s178_s5 = scalar_lea.vmem (%p81_p4), [#allocation3], %s620_s28 }
  0x16   : > { %v200_v0 = vld [vmem:[%s903_s4] sm:$0xf] (%p81_p4)  ;;  %v202_v1 = vld [vmem:[%s903_s4 + $0x8] sm:$0xf] (%p81_p4)  ;;  %v204_v2 = vld [vmem:[%s903_s4 + $0x10] sm:$0xf] (%p81_p4) }
  0x17   : > { %201 = vst [vmem:[%s178_s5] sm:$0xf] (%p81_p4), %v200_v0  ;;  %203 = vst [vmem:[%s178_s5 + $0x4] sm:$0xf] (%p81_p4), %v202_v1  ;;  %v206_v3 = vld [vmem:[%s903_s4 + $0x18] sm:$0xf] (%p81_p4) }
  0x18   : > { %v208_v4 = vld [vmem:[%s903_s4 + $0x20] sm:$0xf]  ;;  %205 = vst [vmem:[%s178_s5 + $0x8] sm:$0xf] %v204_v2  ;;  %207 = vst [vmem:[%s178_s5 + $0xc] sm:$0xf] %v206_v3 }
  0x19   : > { %209 = vst [vmem:[%s178_s5 + $0x10] sm:$0xf] %v208_v4  ;;  %v210_v5 = vld [vmem:[%s903_s4 + $0x28] sm:$0xf]  ;;  %v212_v6 = vld [vmem:[%s903_s4 + $0x30] sm:$0xf] }
  0x1a   : > { %v214_v7 = vld [vmem:[%s903_s4 + $0x38] sm:$0xf]  ;;  %211 = vst [vmem:[%s178_s5 + $0x14] sm:$0xf] %v210_v5  ;;  %213 = vst [vmem:[%s178_s5 + $0x18] sm:$0xf] %v212_v6 }
  0x1b   : > { %215 = vst [vmem:[%s178_s5 + $0x1c] sm:$0xf] %v214_v7  ;;  %v216_v8 = vld [vmem:[%s903_s4 + $0x40] sm:$0xf]  ;;  %v218_v9 = vld [vmem:[%s903_s4 + $0x48] sm:$0xf] }
  0x1c   : > { %v220_v10 = vld [vmem:[%s903_s4 + $0x50] sm:$0xf]  ;;  %217 = vst [vmem:[%s178_s5 + $0x20] sm:$0xf] %v216_v8  ;;  %219 = vst [vmem:[%s178_s5 + $0x24] sm:$0xf] %v218_v9 }
  0x1d   : > { %221 = vst [vmem:[%s178_s5 + $0x28] sm:$0xf] %v220_v10  ;;  %v222_v11 = vld [vmem:[%s903_s4 + $0x58] sm:$0xf]  ;;  %v224_v12 = vld [vmem:[%s903_s4 + $0x60] sm:$0xf] }
  0x1e   : > { %v226_v13 = vld [vmem:[%s903_s4 + $0x68] sm:$0xf]  ;;  %223 = vst [vmem:[%s178_s5 + $0x2c] sm:$0xf] %v222_v11  ;;  %225 = vst [vmem:[%s178_s5 + $0x30] sm:$0xf] %v224_v12 }
  0x1f   : > { %227 = vst [vmem:[%s178_s5 + $0x34] sm:$0xf] %v226_v13  ;;  %v228_v14 = vld [vmem:[%s903_s4 + $0x70] sm:$0xf]  ;;  %v230_v15 = vld [vmem:[%s903_s4 + $0x78] sm:$0xf] }
  0x20   : > { %229 = vst [vmem:[%s178_s5 + $0x38] sm:$0xf] %v228_v14  ;;  %231 = vst [vmem:[%s178_s5 + $0x3c] sm:$0xf] %v230_v15 }
  0x21 PF: > { %p622_p11 = scmp.ge.s32.totalorder %s813_s17, 1  ;;  %p292_p12 = scmp.lt.s32.totalorder %s813_s17, 3 }
  0x23   : > { %p293_p13 = pnand %p622_p11, %p292_p12 }
  0x24   : > { %s924_s6 = sand.u32 (!%p293_p13), 1, %s797_s13   ;;  %p343_p0 = scmp.lt.s32.totalorder (!%p293_p13), %s805_s15, 1 }
  0x25   : > { %296 = sbr.rel (%p293_p13) target bundleno = 289 (0x121), region = 69  ;;  %s623_s7 = sshll.u32 (!%p293_p13), %s924_s6, 6 }
  0x26   : > { %s301_s8 = scalar_lea.vmem (!%p293_p13), [#allocation3], %s623_s7  ;;  %s624_s23 = sshll.u32 (!%p293_p13), %s924_s6, 4 }
  0x27   : > { %s332_s26 = scalar_lea.vmem (!%p293_p13), [#allocation4], %s624_s23  ;;  %s636_s28 = sshll.u32 (!%p293_p13), %s805_s15, 7 }
  0x28   : > { %s505_s27 = sshll.u32 (!%p293_p13), %s332_s26, 4  ;;  %s942_s4 = scalar_lea.hbm (!%p293_p13), %s993_s3, %s636_s28  ;;  %s937_s27 = int_to_ptr.vmem [resolvable:$true] %s505_s27 }
  0x29   : > { %s490_s5 = scalar_lea.sflag (!%p293_p13), [#allocation5], %s924_s6  ;;  %s737_s7 = scalar_lea.vmem (!%p293_p13), %s937_s27, 256 }
  0x2a   : > { %v815_v16 = vmov 0.0   ;;  %vm816_vm0 = vmmov 0   ;;  %v728_v17 = vld [vmem:[%s301_s8 + $0x38] sm:$0xff]   ;;  %v729_v18 = vld [vmem:[%s301_s8 + $0x30] sm:$0xff]   ;;  %v730_v19 = vld [vmem:[%s301_s8 + $0x28] sm:$0xff]   ;;  %s344_s11 = scalar_select %p343_p0, %s805_s15, 1 }
  0x2b   : > { %648 = vmatprep.subr.bf16.mxu0 %v815_v16  ;;  %664 = vmatprep.mubr.msk.bf16.mxu0 %vm816_vm0, %v815_v16  ;;  %v731_v20 = vld [vmem:[%s301_s8 + $0x20] sm:$0xff]   ;;  %v732_v21 = vld [vmem:[%s301_s8 + $0x18] sm:$0xff]   ;;  %v733_v22 = vld [vmem:[%s301_s8 + $0x10] sm:$0xff]   ;;  %p738_p1 = scmp.ne.s32.totalorder %s937_s27, %s737_s7  ;;  %s817_s15 = smov [#allocation4]  }
  0x2c   : > { %649 = vmatpush3.bf16.msra.mxu0 %v728_v17  ;;  %v734_v23 = vld [vmem:[%s301_s8 + $0x8] sm:$0xff]   ;;  %v735_v24 = vld [vmem:[%s301_s8] sm:$0xff]   ;;  %s345_s21 = scalar_lea.vmem %s992_s2, %s344_s11  ;;  %s741_s8 = sshll.u32 %s817_s15, 4  ;;  %s742_s8 = int_to_ptr.vmem [resolvable:$false] %s741_s8 }
  0x2d   : > { %650 = vmatprep.subr.bf16.mxu0 %v815_v16  ;;  %v736_v25 = vld [vmem:[%s990_s0] sm:$0xff]   ;;  %p739_p2 = pnand %p738_p1, %p880_p5  ;;  %s743_s9 = scalar_lea.vmem %s742_s8, 512 }
  0x2e   : > { %v634_v26 = vld [vmem:[%s345_s21] ss:$0 sm:$0xff]  ;;  %p744_p4 = scmp.lt.s32.totalorder %s937_s27, %s742_s8  ;;  %p745_p6 = scmp.lt.s32.totalorder %s743_s9, %s737_s7 }
  0x2f   : > { %p740_p3 = pneg %p739_p2 }
  0x30   : > { %651 = vmatpush3.bf16.msra.mxu0 %v729_v18  ;;  %p746_p7 = por %p745_p6, %p744_p4 }
  0x31   : > { %652 = vmatprep.subr.bf16.mxu0 %v815_v16 }
  0x32   : > { %p747_p8 = pnand %p746_p7, %p740_p3 }
  0x34   : > { %653 = vmatpush3.bf16.msra.mxu0 %v730_v19 }
  0x35   : > { %654 = vmatprep.subr.bf16.mxu0 %v815_v16 }
  0x38   : > { %655 = vmatpush3.bf16.msra.mxu0 %v731_v20 }
  0x39   : > { %656 = vmatprep.subr.bf16.mxu0 %v815_v16 }
  0x3c   : > { %657 = vmatpush3.bf16.msra.mxu0 %v732_v21 }
  0x3d   : > { %658 = vmatprep.subr.bf16.mxu0 %v815_v16 }
  0x40   : > { %659 = vmatpush3.bf16.msra.mxu0 %v733_v22 }
  0x41   : > { %660 = vmatprep.subr.bf16.mxu0 %v815_v16 }
  0x44   : > { %661 = vmatpush3.bf16.msra.mxu0 %v734_v23 }
  0x45   : > { %662 = vmatprep.subr.bf16.mxu0 %v815_v16 }
  0x48   : > { %663 = vmatpush3.bf16.msra.mxu0 %v735_v24 }
  0x4b   : > { %665 = vmatmul.mubr.bf16.vlgmr.msra.gmra.mxu0 %v736_v25 }
 0x10b   : > { %v462_v27 = vpop.f32.mrf.mxu0 }
 0x10c   : > { %v485_v28 = vadd.f32 %v634_v26, %v462_v27 }
 0x10d   : > { %v666_v29 = vpop.f32.mrf.mxu0 }
 0x10e   : > { %487 = vst [vmem:[%s332_s26] sm:$0xff] %v485_v28 }
 0x10f   : > { %v465_v30 = vpop.f32.mrf.mxu0 }
 0x110   : > { %v486_v31 = vadd.f32 %v634_v26, %v465_v30 }
 0x111   : > { %v667_v32 = vpop.f32.mrf.mxu0 }
 0x112   : > { %488 = vst [vmem:[%s332_s26 + $0x8] sm:$0xff] %v486_v31 }
 0x113   : > { %750 = shalt.err (!%p747_p8)
}
 0x114   : > { %s751_s10 = scalar_lea.hbm %s942_s4, 256  ;;  %s755_s19 = scalar_lea.hbm %s993_s3, 512 }
 0x115   : > { %p752_p11 = scmp.ne.s32.totalorder %s942_s4, %s751_s10  ;;  %p756_p0 = scmp.lt.s32.totalorder %s942_s4, %s993_s3 }
 0x116   : > { %p757_p1 = scmp.lt.s32.totalorder %s755_s19, %s751_s10 }
 0x117   : > { %p753_p12 = pnand %p752_p11, %p880_p5 }
 0x118   : > { %p758_p2 = por %p757_p1, %p756_p0 }
 0x119   : > { %p754_p13 = pneg %p753_p12 }
 0x11b   : > { %p759_p3 = pnand %p758_p2, %p754_p13 }
 0x11d   : > { %762 = shalt.err (!%p759_p3)
}
 0x11e   : > { %s818_s26 = smov 128   ;;  %s819_s28 = smov 256  }
 0x11f   : > { %s820_s29 = smov 8  }
 0x120   : > { %668 = dma.vmem_to_hbm [thread:$0]  (%p880_p5), %s937_s27, 256, %s942_s4, %s490_s5, %s818_s26, %s819_s28, %s820_s29  }
 0x121 PF: > { %s520_s30 = sand.u32 1, %s793_s12   ;;  %p671_p4 = pnand %p619_p10, %p891_p9 }
 0x122   : > { %s521_s7 = scalar_lea.sflag [#allocation5], %s520_s30 }
 0x123   : > { %p672_p6 = pneg %p671_p4 }
 0x125   : > { %788 = dma.done.wait (%p672_p6), %s521_s7, 256  }
 0x126   : > { %790 = vsyncadd (%p672_p6), %s521_s7, 4294967040  ;;  %s16_s17 = sadd.s32 1, %s813_s17   ;;  %s996_s12 = smov %s797_s13 }
 0x127   : > { %p13_p7 = scmp.ge.s32.totalorder %s16_s17, 4   ;;  %s997_s13 = smov %s801_s14 }
 0x128   : > { %s998_s14 = smov %s889_s24  ;;  %s999_s15 = smov %s809_s16 }
 0x129   : > { %s1000_s16 = smov %s1002_s20  ;;  %15 = sbr.rel (!%p13_p7) target bundleno = 4 (0x4), region = 127 }
 0x12e   :  { %526 = vsyncpa [#allocation5], 1 }
 0x12f   :  { %528 = vsyncpa [#allocation5 + $0x1], 1 }

</bundles_post_ra>
